<compile_context>
chip_gen: v7x
topology: tpu7x:2x2x1
jax: 0.10.0
libtpu: 0.0.40
codegen_flags: <defaults>
</compile_context>

<pallas_src>
import functools

import jax
import jax.numpy as jnp
from jax import lax
from jax.experimental import pallas as pl
from jax.experimental.pallas import tpu as pltpu

TEMPERATURE = 0.07
BASE_TEMPERATURE = 0.07


# --------------------------------------------------------------------------
# Kernel 1: "model" (linear projection) + F.normalize(p=2, dim=1)
# --------------------------------------------------------------------------
def _embed_kernel(x_ref, w_ref, feat_ref):
    feat = jnp.dot(x_ref[...], w_ref[...], preferred_element_type=jnp.float32)
    sumsq = jnp.sum(feat * feat, axis=1, keepdims=True)
    # rsqrt -> EUP slot (free-ish) instead of sqrt + divide on the VPU.
    feat_ref[...] = (feat * lax.rsqrt(sumsq + 1e-24)).astype(feat_ref.dtype)


# --------------------------------------------------------------------------
# Kernel 2: per-anchor supervised contrastive loss for one anchor-row tile,
# streaming over contrast-column chunks with running accumulators.
# --------------------------------------------------------------------------
def _supcon_loss_kernel(lab_row_ref, lab_col_ref, contrast_ref, loss_ref, *,
                        col_tile, num_col_tiles, unroll):
    inv_t = jnp.float32(1.0 / TEMPERATURE)
    tm = loss_ref.shape[0]

    # Anchor tile = rows [i*tm, i*tm+tm) of the resident contrast block
    # (no separate anchor input / extra VMEM buffer).
    r_start = pl.multiple_of(pl.program_id(0) * tm, tm)
    anchors = contrast_ref[pl.ds(r_start, tm), :]            # [TM, H]
    lab_row = lab_row_ref[...]                                # [TM, 1] int32
    row_ids = r_start + lax.broadcasted_iota(jnp.int32, (tm, col_tile), 0)

    def body(t, carry):
        sum_exp, pos_sum, n_pos = carry
        c_start = pl.multiple_of(t * col_tile, col_tile)
        chunk = contrast_ref[pl.ds(c_start, col_tile), :]     # [TN, H]
        lab_chunk = lab_col_ref[pl.ds(t, 1), :]               # [1, TN] int32

        # raw similarity (NT matmul, contraction on the last axes; no [H, B]
        # transpose materialized), f32 accumulation.
        s = lax.dot_general(anchors, chunk,
                            dimension_numbers=(((1,), (1,)), ((), ())),
                            preferred_element_type=jnp.float32)   # [TM, TN]
        # Constant-max stabilization: row max == diagonal == 1/T for unit
        # norms, so stabilized logits are (dot - 1) / T (always <= ~0).
        logits = (s - 1.0) * inv_t

        col_ids = c_start + lax.broadcasted_iota(jnp.int32, (tm, col_tile), 1)
        not_self = col_ids != row_ids
        pos = jnp.logical_and(lab_row == lab_chunk, not_self)

        e = jnp.where(not_self, jnp.exp(logits), 0.0)
        sum_exp = sum_exp + jnp.sum(e, axis=1, keepdims=True)
        pos_sum = pos_sum + jnp.sum(jnp.where(pos, logits, 0.0),
                                    axis=1, keepdims=True)
        n_pos = n_pos + jnp.sum(pos.astype(jnp.float32), axis=1, keepdims=True)
        return sum_exp, pos_sum, n_pos

    zeros = jnp.zeros((tm, 1), jnp.float32)
    sum_exp, pos_sum, n_pos = lax.fori_loop(
        0, num_col_tiles, body, (zeros, zeros, zeros), unroll=unroll)

    # sum(mask*log_prob) = sum(mask*logits) - n_pos*log_denom; log_prob never
    # materialized.  Zero-positive anchors contribute 0 instead of NaN.
    log_denom = jnp.log(sum_exp)
    mean_log_prob_pos = (pos_sum - n_pos * log_denom) / jnp.maximum(n_pos, 1.0)
    loss_ref[...] = -(TEMPERATURE / BASE_TEMPERATURE) * mean_log_prob_pos


# --------------------------------------------------------------------------
# Wrapper
# --------------------------------------------------------------------------
def supcon_loss(x, w, labels, *, feat_dtype=jnp.bfloat16,
                row_tile=None, col_tile=None):
    """x: [B, IN] raw inputs, w: [IN, H] projection, labels: [B] int."""
    B, IN = x.shape
    H = w.shape[1]

    # Tile choices: v6e prefers tm in 256-multiples (2x256^2 MXU), v5e is
    # fine with 128-multiples; column chunk TN bounds the [TM, TN] temporaries
    # (important for v7x 64 MiB VMEM / v5e 16 MiB scoped default).
    tm = row_tile if row_tile is not None else min(B, 256)
    tn = col_tile if col_tile is not None else min(B, 512)
    assert B % tm == 0 and B % tn == 0, "B must be divisible by tile sizes"
    num_row_tiles = B // tm
    num_col_tiles = B // tn

    cparams = pltpu.CompilerParams(
        dimension_semantics=("parallel",),
        vmem_limit_bytes=64 * 1024 * 1024,
    )

    # ---- kernel 1: features = normalize(model(x)), emitted in feat_dtype ----
    feat = pl.pallas_call(
        _embed_kernel,
        out_shape=jax.ShapeDtypeStruct((B, H), feat_dtype),
        grid=(num_row_tiles,),
        in_specs=[
            pl.BlockSpec((tm, IN), lambda i: (i, 0)),   # x row tile
            pl.BlockSpec((IN, H), lambda i: (0, 0)),    # W (grid-invariant)
        ],
        out_specs=pl.BlockSpec((tm, H), lambda i: (i, 0)),
        compiler_params=cparams,
    )(x, w)

    # Tiny int32 label vectors; the [B, B] mask is built inside the kernel.
    # Column labels are pre-chunked so the kernel only slices sublane dims.
    labels_i32 = labels.astype(jnp.int32)
    labels_row = labels_i32.reshape(B, 1)
    labels_col = labels_i32.reshape(num_col_tiles, tn)

    kernel = functools.partial(
        _supcon_loss_kernel,
        col_tile=tn,
        num_col_tiles=num_col_tiles,
        unroll=num_col_tiles <= 8,
    )

    # ---- kernel 2: per-anchor losses -----------------------------------
    per_anchor = pl.pallas_call(
        kernel,
        out_shape=jax.ShapeDtypeStruct((B, 1), jnp.float32),
        grid=(num_row_tiles,),
        in_specs=[
            pl.BlockSpec((tm, 1), lambda i: (i, 0)),              # anchor labels
            pl.BlockSpec((num_col_tiles, tn), lambda i: (0, 0)),  # contrast labels
            pl.BlockSpec((B, H), lambda i: (0, 0)),               # contrast feats
        ],
        out_specs=pl.BlockSpec((tm, 1), lambda i: (i, 0)),
        compiler_params=cparams,
    )(labels_row, labels_col, feat)

    # Final scalar mean over anchors (cheap, done by XLA).
    return jnp.mean(per_anchor)


# --------------------------------------------------------------------------
# Pure-JAX reference mirroring the PyTorch forward (n_views=1, mode='all')
# --------------------------------------------------------------------------
def _reference(x, w, labels):
    feat = x.astype(jnp.float32) @ w.astype(jnp.float32)
    feat = feat / jnp.maximum(
        jnp.sqrt(jnp.sum(feat * feat, axis=1, keepdims=True)), 1e-12)
    logits = feat @ feat.T / TEMPERATURE
    logits = logits - jnp.max(logits, axis=1, keepdims=True)
    B = feat.shape[0]
    logits_mask = 1.0 - jnp.eye(B, dtype=jnp.float32)
    mask = (labels[:, None] == labels[None, :]).astype(jnp.float32) * logits_mask
    exp_logits = jnp.exp(logits) * logits_mask
    log_prob = logits - jnp.log(jnp.sum(exp_logits, axis=1, keepdims=True))
    mean_log_prob_pos = jnp.sum(mask * log_prob, axis=1) / jnp.sum(mask, axis=1)
    return jnp.mean(-(TEMPERATURE / BASE_TEMPERATURE) * mean_log_prob_pos)


if __name__ == "__main__":
    B, IN, H = 8, 16, 32
    key = jax.random.PRNGKey(0)
    kx, kw = jax.random.split(key)

    x = jax.random.normal(kx, (B, IN), dtype=jnp.float32)
    # Deterministic "model" parameters (linear projection standing in for the
    # sentence-transformer passed to SupConLoss.__init__).
    w = jax.random.normal(kw, (IN, H), dtype=jnp.float32) * 0.1
    # Labels with repeated classes so every anchor has at least one positive.
    labels = jnp.array([0, 0, 1, 1, 2, 2, 3, 3], dtype=jnp.int32)

    ref = _reference(x, w, labels)

    # f32-feature path: tight parity with the reference.
    loss_f32 = supcon_loss(x, w, labels, feat_dtype=jnp.float32)
    jax.block_until_ready(loss_f32)
    assert jnp.isfinite(loss_f32)
    assert jnp.allclose(loss_f32, ref, rtol=1e-3, atol=1e-3), (loss_f32, ref)

    # bf16-feature path (production configuration): looser tolerance.
    loss_bf16 = supcon_loss(x, w, labels)  # feat_dtype defaults to bf16
    jax.block_until_ready(loss_bf16)
    assert jnp.isfinite(loss_bf16)
    assert jnp.allclose(loss_bf16, ref, rtol=5e-2, atol=2e-1), (loss_bf16, ref)

    print("KERNEL_OK")
</pallas_src>

<mosaic_0001>
module attributes {stable_mosaic.version = 11 : i64} {
  func.func @_embed_kernel(%arg0: i32, %arg1: memref<8x16xf32, #tpu.memory_space<vmem>>, %arg2: memref<16x32xf32, #tpu.memory_space<vmem>>, %arg3: memref<8x32xf32, #tpu.memory_space<vmem>>) attributes {dimension_semantics = [#tpu.dimension_semantics<parallel>], iteration_bounds = array<i64: 1>, scalar_prefetch = 0 : i64, scratch_operands = 0 : i64, tpu.core_type = #tpu.core_type<tc>, window_params = [{transform_indices = @transform_0, window_bounds = array<i64: 8, 16>}, {pipeline_mode = #tpu.pipeline_mode<synchronous>, transform_indices = @transform_1, window_bounds = array<i64: 16, 32>}, {transform_indices = @transform_2, window_bounds = array<i64: 8, 32>}]} {
    %c0 = arith.constant 0 : index
    %c0_0 = arith.constant 0 : index
    %0 = vector.load %arg1[%c0, %c0_0] : memref<8x16xf32, #tpu.memory_space<vmem>>, vector<8x16xf32>
    %c0_1 = arith.constant 0 : index
    %c0_2 = arith.constant 0 : index
    %1 = vector.load %arg2[%c0_1, %c0_2] : memref<16x32xf32, #tpu.memory_space<vmem>>, vector<16x32xf32>
    %cst = arith.constant dense<0.000000e+00> : vector<8x32xf32>
    %2 = tpu.matmul %0, %1, %cst {dimension_numbers = #tpu.dot_dimension_numbers<[1], [0], [0], [1], [0, 0, 1, 1], [], []>} : vector<8x16xf32>, vector<16x32xf32>, vector<8x32xf32> -> vector<8x32xf32>
    %3 = arith.mulf %2, %2 : vector<8x32xf32>
    %cst_3 = arith.constant dense<0.000000e+00> : vector<8xf32>
    %4 = vector.multi_reduction <add>, %3, %cst_3 [1] : vector<8x32xf32> to vector<8xf32>
    %5 = vector.shape_cast %4 : vector<8xf32> to vector<8x1xf32>
    %cst_4 = arith.constant 1.000000e-24 : f32
    %6 = vector.broadcast %cst_4 : f32 to vector<8x1xf32>
    %7 = arith.addf %5, %6 : vector<8x1xf32>
    %8 = math.rsqrt %7 : vector<8x1xf32>
    %9 = vector.broadcast %8 : vector<8x1xf32> to vector<8x32xf32>
    %10 = arith.mulf %2, %9 : vector<8x32xf32>
    %c0_5 = arith.constant 0 : index
    %c0_6 = arith.constant 0 : index
    %11 = vector.load %arg3[%c0_5, %c0_6] : memref<8x32xf32, #tpu.memory_space<vmem>>, vector<8x32xf32>
    tpu.vector_store %arg3[%c0_5, %c0_6], %10 {strides = array<i32>} : memref<8x32xf32, #tpu.memory_space<vmem>>, vector<8x32xf32>,
    return
  }
  func.func @transform_0(%arg0: i32) -> (i32, i32) {
    %c0_i32 = arith.constant 0 : i32
    %c0_i32_0 = arith.constant 0 : i32
    return %arg0, %c0_i32 : i32, i32
  }
  func.func @transform_1(%arg0: i32) -> (i32, i32) {
    %c0_i32 = arith.constant 0 : i32
    %c0_i32_0 = arith.constant 0 : i32
    %c0_i32_1 = arith.constant 0 : i32
    return %c0_i32, %c0_i32_0 : i32, i32
  }
  func.func @transform_2(%arg0: i32) -> (i32, i32) {
    %c0_i32 = arith.constant 0 : i32
    %c0_i32_0 = arith.constant 0 : i32
    return %arg0, %c0_i32 : i32, i32
  }
}

</mosaic_0001>

<bundles_post_ra>
// kernel: tpu_custom_call.1
= control target key start
LH: loop header
LB: loop body
LE: loop exit
PB: predicated region body
PF: predicated region fallthrough
CT: control target
= control target key end

     0   :  { %7 = vsyncpa [#allocation3], 0  ;;  %s302_s0 = inlined_call_operand.hbm [shape: f32[8,16], index: 0, kind: input, shape index: {}]   ;;  %s303_s1 = inlined_call_operand.hbm [shape: f32[16,32], index: 1, kind: input, shape index: {}]   ;;  %s304_s2 = inlined_call_operand.hbm [shape: f32[8,32], index: 2, kind: output, shape index: {}]  }
   0x1   :  { %8 = vsyncpa [#allocation6], 0 }
   0x2   :  { %9 = vsyncpa [#allocation4], 0  ;;  %s236_s9 = smov [#allocation2]   ;;  %s237_s11 = smov [#allocation5]  }
   0x3   :  { %s16_s10 = sshll.u32 %s236_s9, 4  ;;  %s25_s12 = sshll.u32 %s237_s11, 4  ;;  %s17_s10 = int_to_ptr.vmem [resolvable:$true] %s16_s10  ;;  %s259_s12 = int_to_ptr.vmem [resolvable:$true] %s25_s12 }
   0x4   :  { %s164_s15 = scalar_lea.hbm %s302_s0, 128 }
   0x5   :  { %p165_p0 = scmp.ne.s32.totalorder %s302_s0, %s164_s15  ;;  %p168_p1 = scmp.lt.u32.totalorder %s164_s15, %s302_s0 }
   0x7   :  { %p170_p2 = pnand %p168_p1, %p165_p0 }
   0x9   :  { %173 = shalt.err (!%p170_p2)
}
   0xa   :  { %s174_s20 = scalar_lea.vmem %s17_s10, 128  ;;  %p179_p4 = scmp.lt.s32.totalorder %s17_s10, %s17_s10 }
   0xb   :  { %p175_p3 = scmp.ne.s32.totalorder %s17_s10, %s174_s20  ;;  %p180_p5 = scmp.lt.s32.totalorder %s174_s20, %s174_s20 }
   0xd   :  { %p181_p6 = por %p180_p5, %p179_p4 }
   0xf   :  { %p182_p7 = pnand %p181_p6, %p175_p3 }
  0x11   :  { %185 = shalt.err (!%p182_p7)
}
  0x12   :  { %19 = dma.hbm_to_vmem [thread:$0]  %s302_s0, 128, %s17_s10, [#allocation3]  }
  0x13   :  { %s186_s25 = scalar_lea.hbm %s303_s1, 256 }
  0x14   :  { %p187_p8 = scmp.ne.s32.totalorder %s303_s1, %s186_s25  ;;  %p190_p9 = scmp.lt.u32.totalorder %s186_s25, %s303_s1 }
  0x16   :  { %p192_p10 = pnand %p190_p9, %p187_p8 }
  0x18   :  { %195 = shalt.err (!%p192_p10)
}
  0x19   :  { %s196_s30 = scalar_lea.vmem %s259_s12, 256  ;;  %p201_p12 = scmp.lt.s32.totalorder %s259_s12, %s259_s12 }
  0x1a   :  { %p197_p11 = scmp.ne.s32.totalorder %s259_s12, %s196_s30  ;;  %p202_p13 = scmp.lt.s32.totalorder %s196_s30, %s196_s30 }
  0x1c   :  { %p203_p0 = por %p202_p13, %p201_p12 }
  0x1e   :  { %p204_p1 = pnand %p203_p0, %p197_p11 }
  0x20   :  { %207 = shalt.err (!%p204_p1)
}
  0x21   :  { %s238_s0 = smov 128   ;;  %s239_s3 = smov 8  }
  0x22   :  { %31 = dma.hbm_to_vmem [thread:$0]  %s303_s1, 256, %s259_s12, [#allocation6], %s238_s0, %s238_s0, %s239_s3  }
  0x23   :  { %230 = dma.done.wait [#allocation3], 128  }
  0x24   :  { %231 = vsyncadd [#allocation3], 4294967168 }
  0x25   :  { %232 = dma.done.wait [#allocation6], 256  }
  0x26   :  { %233 = vsyncadd [#allocation6], 4294967040  ;;  %v240_v0 = vmov 0.0|0.0   ;;  %vm241_vm0 = vmmov 0   ;;  %v242_v1 = vmov 0.0   ;;  %v39_v2 = vld [vmem:[#allocation5] sm:$0xff] }
  0x27   :  { %151 = vmatprep.subr.bf16.mxu0 %v240_v0  ;;  %148 = vmatprep.mubr.msk.f32.mxu0 %vm241_vm0, %v242_v1  ;;  %v40_v3 = vld [vmem:[#allocation5 + $0x8] sm:$0xff]  ;;  %v38_v5 = vld [vmem:[#allocation2] sm:$0xff]  ;;  %vm41_vm1 = vcmask 130048   ;;  %vm116_vm2 = vcmask 261120   ;;  %s243_s1 = smov [#allocation7]  }
  0x28   :  { %v152_v4 = vpack.c.bf16 %v40_v3, %v39_v2  ;;  %s130_s6 = sshll.u32 %s243_s1, 4  ;;  %s131_s6 = int_to_ptr.vmem [resolvable:$true] %s130_s6 }
  0x29   :  { %s208_s7 = scalar_lea.vmem %s131_s6, 128  ;;  %p213_p3 = scmp.lt.s32.totalorder %s131_s6, %s131_s6 }
  0x2a   :  { %153 = vmatpush3.bf16.msra.mxu0 %v152_v4  ;;  %p209_p2 = scmp.ne.s32.totalorder %s131_s6, %s208_s7  ;;  %p214_p4 = scmp.lt.s32.totalorder %s208_s7, %s208_s7 }
  0x2c   :  { %p215_p5 = por %p214_p4, %p213_p3 }
  0x2d   :  { %149 = vmatmul.mubr.msk.f32.vlgmr.msra.gmra.mrb[0].mxu0 %vm41_vm1, %v38_v5 }
  0x2e   :  { %p216_p6 = pnand %p215_p5, %p209_p2 }
 0x100   :  { %v111_v6 = vpop.f32.mrb[0].mxu0 }
 0x101   :  { %v150_v7 = vpop.f32.mrb[1].mxu0  ;;  %v115_v8 = vmul.f32 %v111_v6, %v111_v6 }
 0x103   :  { %v117_v9 = vsel %vm116_vm2, %v115_v8, 0.0 }
 0x104   :  { %118 = vadd.xlane.f32.xlu0 %v117_v9 }
 0x191   :  { %v119_v10 = vpop.xlane.xlu0 %118 }
 0x192   :  { %v120_v11 = vadd.f32 1e-24, %v119_v10 }
 0x194   :  { %162 = vrsqrt.f32 %v120_v11 }
 0x19e   :  { %v163_v12 = vpop.eup %162 }
 0x19f   :  { %v122_v13 = vmul.f32 %v163_v12, %v111_v6 }
 0x1a1   :  { %123 = vst.msk [vmem:[#allocation7] sm:$0xff] %vm116_vm2, %v122_v13 }
 0x1a2   :  { %219 = shalt.err (!%p216_p6)
}
 0x1a3   :  { %s220_s10 = scalar_lea.hbm %s304_s2, 128 }
 0x1a4   :  { %p221_p7 = scmp.ne.s32.totalorder %s304_s2, %s220_s10  ;;  %p224_p8 = scmp.lt.u32.totalorder %s220_s10, %s304_s2 }
 0x1a6   :  { %p226_p9 = pnand %p224_p8, %p221_p7 }
 0x1a8   :  { %229 = shalt.err (!%p226_p9)
}
 0x1a9   :  { %133 = dma.vmem_to_hbm [thread:$0]  %s131_s6, 128, %s304_s2, [#allocation4]  }
 0x1aa   :  { %234 = dma.done.wait [#allocation4], 128  }
 0x1ab   :  { %235 = vsyncadd [#allocation4], 4294967168 }
 0x1ac   :  { %137 = vsyncpa [#allocation3], 1 }
 0x1ad   :  { %138 = vsyncpa [#allocation6], 1 }
 0x1ae   :  { %139 = vsyncpa [#allocation4], 1 }

</bundles_post_ra>
